<compile_context>
chip_gen: v7x
topology: tpu7x:2x2x1
jax: 0.10.0
libtpu: 0.0.40
codegen_flags: <defaults>
</compile_context>

<pallas_src>
import functools

import jax
import jax.numpy as jnp
from jax.experimental import pallas as pl
from jax.experimental.pallas import tpu as pltpu

# Layer dims of the PyTorch module.
D0, D1, D2, D3 = 8, 6, 4, 1

# Offsets into the packed parameter vector (row-major W[in, out], then bias).
W1_OFF = 0
B1_OFF = W1_OFF + D0 * D1        # 48
W2_OFF = B1_OFF + D1             # 54
B2_OFF = W2_OFF + D1 * D2        # 78
W3_OFF = B2_OFF + D2             # 82
B3_OFF = W3_OFF + D2 * D3        # 86
N_PARAMS = B3_OFF + D3           # 87


def mlp_kernel(p_ref, x_ref, o_ref):
    """One batch tile of the fused MLP.

    p_ref: (N_PARAMS,) f32 in SMEM  — packed W1,b1,W2,b2,W3,b3 (resident).
    x_ref: (8, TB)      f32 in VMEM — features on sublanes, batch on lanes.
    o_ref: (1, TB)      f32 in VMEM — lane-dense output row.
    """
    # Feature rows; each is (1, TB) with all 128 lanes holding batch elements.
    x_rows = [x_ref[k:k + 1, :] for k in range(D0)]

    def dense_sigmoid(rows, n_in, n_out, w_off, b_off):
        outs = []
        for j in range(n_out):                        # unrolled: tiny & static
            acc = rows[0] * p_ref[w_off + j]          # scalar (SMEM) * vector (VPU)
            for k in range(1, n_in):
                acc = acc + rows[k] * p_ref[w_off + n_out * k + j]
            acc = acc + p_ref[b_off + j]
            outs.append(jax.nn.sigmoid(acc))          # transcendental -> EUP slot
        return outs

    h1 = dense_sigmoid(x_rows, D0, D1, W1_OFF, B1_OFF)   # 8 -> 6
    h2 = dense_sigmoid(h1, D1, D2, W2_OFF, B2_OFF)       # 6 -> 4
    y = dense_sigmoid(h2, D2, D3, W3_OFF, B3_OFF)        # 4 -> 1
    o_ref[...] = y[0]


def _round_up(n, m):
    return ((n + m - 1) // m) * m


@functools.partial(jax.jit, static_argnames=("block_batch",))
def mlp_forward(x, packed_params, *, block_batch=1024):
    """x: (B, 8) f32 (same layout as the PyTorch module). Returns (B, 1)."""
    B = x.shape[0]
    # Layout plumbing: put batch on the lane axis.  (For tiny B the fixed
    # pallas_call overhead dominates ~400 FLOPs; this kernel targets large B.)
    xt = x.T                                              # (8, B)
    tb = min(_round_up(block_batch, 128), _round_up(B, 128))
    b_pad = _round_up(B, tb)
    if b_pad != B:
        xt = jnp.pad(xt, ((0, 0), (0, b_pad - B)))
    grid = (b_pad // tb,)

    out = pl.pallas_call(
        mlp_kernel,
        out_shape=jax.ShapeDtypeStruct((1, b_pad), jnp.float32),
        grid=grid,
        in_specs=[
            # All 87 params in one SMEM-resident vector.
            pl.BlockSpec(memory_space=pltpu.MemorySpace.SMEM),
            # x^T tile: 8 sublanes x TB lanes, auto double-buffered by Pallas.
            pl.BlockSpec((D0, tb), lambda i: (0, i)),
        ],
        # Lane-dense output row -> unmasked vector stores.
        out_specs=pl.BlockSpec((1, tb), lambda i: (0, i)),
        compiler_params=pltpu.CompilerParams(
            # Batch tiles are independent: shard across both TCs on v7x.
            dimension_semantics=("parallel",),
        ),
    )(packed_params, xt)
    return out[0, :B].reshape(B, 1)


def init_params(key):
    """torch.nn.Linear-style init (uniform +/- 1/sqrt(fan_in)).

    Weights are stored as [in, out] (transpose of PyTorch's [out, in]);
    biases as [out].
    """
    dims = [(D0, D1), (D1, D2), (D2, D3)]
    params = []
    for i, (fan_in, fan_out) in enumerate(dims):
        kw, kb = jax.random.split(jax.random.fold_in(key, i))
        bound = 1.0 / jnp.sqrt(jnp.float32(fan_in))
        w = jax.random.uniform(kw, (fan_in, fan_out), jnp.float32, -bound, bound)
        b = jax.random.uniform(kb, (fan_out,), jnp.float32, -bound, bound)
        params.extend([w, b])
    return tuple(params)


def pack_params(params):
    """Flatten W1,b1,W2,b2,W3,b3 into one f32[N_PARAMS] vector (row-major W[in,out])."""
    packed = jnp.concatenate([p.reshape(-1).astype(jnp.float32) for p in params])
    assert packed.shape == (N_PARAMS,)
    return packed


def reference_forward(x, params):
    w1, b1, w2, b2, w3, b3 = params
    h = jax.nn.sigmoid(x @ w1 + b1)
    h = jax.nn.sigmoid(h @ w2 + b2)
    return jax.nn.sigmoid(h @ w3 + b3)


if __name__ == "__main__":
    key = jax.random.PRNGKey(0)
    k_x, k_p = jax.random.split(key)

    batch = 512          # small demo; tiled into 128-lane batch blocks below
    x = jax.random.normal(k_x, (batch, D0), dtype=jnp.float32)
    params = init_params(k_p)
    packed = pack_params(params)

    y = mlp_forward(x, packed, block_batch=128)   # grid=(4,) to exercise pipelining
    y = jax.block_until_ready(y)

    y_ref = reference_forward(x, params)
    assert y.shape == (batch, 1)
    assert jnp.allclose(y, y_ref, atol=1e-5, rtol=1e-5)

    print("KERNEL_OK")
</pallas_src>

<mosaic_0001>
module attributes {stable_mosaic.version = 11 : i64} {
  func.func @mlp_kernel(%arg0: i32, %arg1: memref<87xf32, #tpu.memory_space<smem>>, %arg2: memref<8x128xf32, #tpu.memory_space<vmem>>, %arg3: memref<1x128xf32, #tpu.memory_space<vmem>>) attributes {dimension_semantics = [#tpu.dimension_semantics<parallel>], iteration_bounds = array<i64: 4>, scalar_prefetch = 0 : i64, scratch_operands = 0 : i64, tpu.core_type = #tpu.core_type<tc>, window_params = [{transform_indices = @transform_0, window_bounds = array<i64: 87>}, {transform_indices = @transform_1, window_bounds = array<i64: 8, 128>}, {transform_indices = @transform_2, window_bounds = array<i64: 1, 128>}]} {
    %c0 = arith.constant 0 : index
    %c0_0 = arith.constant 0 : index
    %0 = vector.load %arg2[%c0, %c0_0] : memref<8x128xf32, #tpu.memory_space<vmem>>, vector<1x128xf32>
    %c1 = arith.constant 1 : index
    %c0_1 = arith.constant 0 : index
    %1 = vector.load %arg2[%c1, %c0_1] : memref<8x128xf32, #tpu.memory_space<vmem>>, vector<1x128xf32>
    %c2 = arith.constant 2 : index
    %c0_2 = arith.constant 0 : index
    %2 = vector.load %arg2[%c2, %c0_2] : memref<8x128xf32, #tpu.memory_space<vmem>>, vector<1x128xf32>
    %c3 = arith.constant 3 : index
    %c0_3 = arith.constant 0 : index
    %3 = vector.load %arg2[%c3, %c0_3] : memref<8x128xf32, #tpu.memory_space<vmem>>, vector<1x128xf32>
    %c4 = arith.constant 4 : index
    %c0_4 = arith.constant 0 : index
    %4 = vector.load %arg2[%c4, %c0_4] : memref<8x128xf32, #tpu.memory_space<vmem>>, vector<1x128xf32>
    %c5 = arith.constant 5 : index
    %c0_5 = arith.constant 0 : index
    %5 = vector.load %arg2[%c5, %c0_5] : memref<8x128xf32, #tpu.memory_space<vmem>>, vector<1x128xf32>
    %c6 = arith.constant 6 : index
    %c0_6 = arith.constant 0 : index
    %6 = vector.load %arg2[%c6, %c0_6] : memref<8x128xf32, #tpu.memory_space<vmem>>, vector<1x128xf32>
    %c7 = arith.constant 7 : index
    %c0_7 = arith.constant 0 : index
    %7 = vector.load %arg2[%c7, %c0_7] : memref<8x128xf32, #tpu.memory_space<vmem>>, vector<1x128xf32>
    %c0_8 = arith.constant 0 : index
    %8 = memref.load %arg1[%c0_8] : memref<87xf32, #tpu.memory_space<smem>>
    %9 = vector.broadcast %8 : f32 to vector<1x128xf32>
    %10 = arith.mulf %0, %9 : vector<1x128xf32>
    %c6_9 = arith.constant 6 : index
    %11 = memref.load %arg1[%c6_9] : memref<87xf32, #tpu.memory_space<smem>>
    %12 = vector.broadcast %11 : f32 to vector<1x128xf32>
    %13 = arith.mulf %1, %12 : vector<1x128xf32>
    %14 = arith.addf %10, %13 : vector<1x128xf32>
    %c12 = arith.constant 12 : index
    %15 = memref.load %arg1[%c12] : memref<87xf32, #tpu.memory_space<smem>>
    %16 = vector.broadcast %15 : f32 to vector<1x128xf32>
    %17 = arith.mulf %2, %16 : vector<1x128xf32>
    %18 = arith.addf %14, %17 : vector<1x128xf32>
    %c18 = arith.constant 18 : index
    %19 = memref.load %arg1[%c18] : memref<87xf32, #tpu.memory_space<smem>>
    %20 = vector.broadcast %19 : f32 to vector<1x128xf32>
    %21 = arith.mulf %3, %20 : vector<1x128xf32>
    %22 = arith.addf %18, %21 : vector<1x128xf32>
    %c24 = arith.constant 24 : index
    %23 = memref.load %arg1[%c24] : memref<87xf32, #tpu.memory_space<smem>>
    %24 = vector.broadcast %23 : f32 to vector<1x128xf32>
    %25 = arith.mulf %4, %24 : vector<1x128xf32>
    %26 = arith.addf %22, %25 : vector<1x128xf32>
    %c30 = arith.constant 30 : index
    %27 = memref.load %arg1[%c30] : memref<87xf32, #tpu.memory_space<smem>>
    %28 = vector.broadcast %27 : f32 to vector<1x128xf32>
    %29 = arith.mulf %5, %28 : vector<1x128xf32>
    %30 = arith.addf %26, %29 : vector<1x128xf32>
    %c36 = arith.constant 36 : index
    %31 = memref.load %arg1[%c36] : memref<87xf32, #tpu.memory_space<smem>>
    %32 = vector.broadcast %31 : f32 to vector<1x128xf32>
    %33 = arith.mulf %6, %32 : vector<1x128xf32>
    %34 = arith.addf %30, %33 : vector<1x128xf32>
    %c42 = arith.constant 42 : index
    %35 = memref.load %arg1[%c42] : memref<87xf32, #tpu.memory_space<smem>>
    %36 = vector.broadcast %35 : f32 to vector<1x128xf32>
    %37 = arith.mulf %7, %36 : vector<1x128xf32>
    %38 = arith.addf %34, %37 : vector<1x128xf32>
    %c48 = arith.constant 48 : index
    %39 = memref.load %arg1[%c48] : memref<87xf32, #tpu.memory_space<smem>>
    %40 = vector.broadcast %39 : f32 to vector<1x128xf32>
    %41 = arith.addf %38, %40 : vector<1x128xf32>
    %42 = arith.negf %41 : vector<1x128xf32>
    %43 = math.exp %42 : vector<1x128xf32>
    %cst = arith.constant 1.000000e+00 : f32
    %44 = vector.broadcast %cst : f32 to vector<1x128xf32>
    %45 = arith.addf %44, %43 : vector<1x128xf32>
    %46 = arith.divf %44, %45 : vector<1x128xf32>
    %c1_10 = arith.constant 1 : index
    %47 = memref.load %arg1[%c1_10] : memref<87xf32, #tpu.memory_space<smem>>
    %48 = vector.broadcast %47 : f32 to vector<1x128xf32>
    %49 = arith.mulf %0, %48 : vector<1x128xf32>
    %c7_11 = arith.constant 7 : index
    %50 = memref.load %arg1[%c7_11] : memref<87xf32, #tpu.memory_space<smem>>
    %51 = vector.broadcast %50 : f32 to vector<1x128xf32>
    %52 = arith.mulf %1, %51 : vector<1x128xf32>
    %53 = arith.addf %49, %52 : vector<1x128xf32>
    %c13 = arith.constant 13 : index
    %54 = memref.load %arg1[%c13] : memref<87xf32, #tpu.memory_space<smem>>
    %55 = vector.broadcast %54 : f32 to vector<1x128xf32>
    %56 = arith.mulf %2, %55 : vector<1x128xf32>
    %57 = arith.addf %53, %56 : vector<1x128xf32>
    %c19 = arith.constant 19 : index
    %58 = memref.load %arg1[%c19] : memref<87xf32, #tpu.memory_space<smem>>
    %59 = vector.broadcast %58 : f32 to vector<1x128xf32>
    %60 = arith.mulf %3, %59 : vector<1x128xf32>
    %61 = arith.addf %57, %60 : vector<1x128xf32>
    %c25 = arith.constant 25 : index
    %62 = memref.load %arg1[%c25] : memref<87xf32, #tpu.memory_space<smem>>
    %63 = vector.broadcast %62 : f32 to vector<1x128xf32>
    %64 = arith.mulf %4, %63 : vector<1x128xf32>
    %65 = arith.addf %61, %64 : vector<1x128xf32>
    %c31 = arith.constant 31 : index
    %66 = memref.load %arg1[%c31] : memref<87xf32, #tpu.memory_space<smem>>
    %67 = vector.broadcast %66 : f32 to vector<1x128xf32>
    %68 = arith.mulf %5, %67 : vector<1x128xf32>
    %69 = arith.addf %65, %68 : vector<1x128xf32>
    %c37 = arith.constant 37 : index
    %70 = memref.load %arg1[%c37] : memref<87xf32, #tpu.memory_space<smem>>
    %71 = vector.broadcast %70 : f32 to vector<1x128xf32>
    %72 = arith.mulf %6, %71 : vector<1x128xf32>
    %73 = arith.addf %69, %72 : vector<1x128xf32>
    %c43 = arith.constant 43 : index
    %74 = memref.load %arg1[%c43] : memref<87xf32, #tpu.memory_space<smem>>
    %75 = vector.broadcast %74 : f32 to vector<1x128xf32>
    %76 = arith.mulf %7, %75 : vector<1x128xf32>
    %77 = arith.addf %73, %76 : vector<1x128xf32>
    %c49 = arith.constant 49 : index
    %78 = memref.load %arg1[%c49] : memref<87xf32, #tpu.memory_space<smem>>
    %79 = vector.broadcast %78 : f32 to vector<1x128xf32>
    %80 = arith.addf %77, %79 : vector<1x128xf32>
    %81 = arith.negf %80 : vector<1x128xf32>
    %82 = math.exp %81 : vector<1x128xf32>
    %cst_12 = arith.constant 1.000000e+00 : f32
    %83 = vector.broadcast %cst_12 : f32 to vector<1x128xf32>
    %84 = arith.addf %83, %82 : vector<1x128xf32>
    %85 = arith.divf %83, %84 : vector<1x128xf32>
    %c2_13 = arith.constant 2 : index
    %86 = memref.load %arg1[%c2_13] : memref<87xf32, #tpu.memory_space<smem>>
    %87 = vector.broadcast %86 : f32 to vector<1x128xf32>
    %88 = arith.mulf %0, %87 : vector<1x128xf32>
    %c8 = arith.constant 8 : index
    %89 = memref.load %arg1[%c8] : memref<87xf32, #tpu.memory_space<smem>>
    %90 = vector.broadcast %89 : f32 to vector<1x128xf32>
    %91 = arith.mulf %1, %90 : vector<1x128xf32>
    %92 = arith.addf %88, %91 : vector<1x128xf32>
    %c14 = arith.constant 14 : index
    %93 = memref.load %arg1[%c14] : memref<87xf32, #tpu.memory_space<smem>>
    %94 = vector.broadcast %93 : f32 to vector<1x128xf32>
    %95 = arith.mulf %2, %94 : vector<1x128xf32>
    %96 = arith.addf %92, %95 : vector<1x128xf32>
    %c20 = arith.constant 20 : index
    %97 = memref.load %arg1[%c20] : memref<87xf32, #tpu.memory_space<smem>>
    %98 = vector.broadcast %97 : f32 to vector<1x128xf32>
    %99 = arith.mulf %3, %98 : vector<1x128xf32>
    %100 = arith.addf %96, %99 : vector<1x128xf32>
    %c26 = arith.constant 26 : index
    %101 = memref.load %arg1[%c26] : memref<87xf32, #tpu.memory_space<smem>>
    %102 = vector.broadcast %101 : f32 to vector<1x128xf32>
    %103 = arith.mulf %4, %102 : vector<1x128xf32>
    %104 = arith.addf %100, %103 : vector<1x128xf32>
    %c32 = arith.constant 32 : index
    %105 = memref.load %arg1[%c32] : memref<87xf32, #tpu.memory_space<smem>>
    %106 = vector.broadcast %105 : f32 to vector<1x128xf32>
    %107 = arith.mulf %5, %106 : vector<1x128xf32>
    %108 = arith.addf %104, %107 : vector<1x128xf32>
    %c38 = arith.constant 38 : index
    %109 = memref.load %arg1[%c38] : memref<87xf32, #tpu.memory_space<smem>>
    %110 = vector.broadcast %109 : f32 to vector<1x128xf32>
    %111 = arith.mulf %6, %110 : vector<1x128xf32>
    %112 = arith.addf %108, %111 : vector<1x128xf32>
    %c44 = arith.constant 44 : index
    %113 = memref.load %arg1[%c44] : memref<87xf32, #tpu.memory_space<smem>>
    %114 = vector.broadcast %113 : f32 to vector<1x128xf32>
    %115 = arith.mulf %7, %114 : vector<1x128xf32>
    %116 = arith.addf %112, %115 : vector<1x128xf32>
    %c50 = arith.constant 50 : index
    %117 = memref.load %arg1[%c50] : memref<87xf32, #tpu.memory_space<smem>>
    %118 = vector.broadcast %117 : f32 to vector<1x128xf32>
    %119 = arith.addf %116, %118 : vector<1x128xf32>
    %120 = arith.negf %119 : vector<1x128xf32>
    %121 = math.exp %120 : vector<1x128xf32>
    %cst_14 = arith.constant 1.000000e+00 : f32
    %122 = vector.broadcast %cst_14 : f32 to vector<1x128xf32>
    %123 = arith.addf %122, %121 : vector<1x128xf32>
    %124 = arith.divf %122, %123 : vector<1x128xf32>
    %c3_15 = arith.constant 3 : index
    %125 = memref.load %arg1[%c3_15] : memref<87xf32, #tpu.memory_space<smem>>
    %126 = vector.broadcast %125 : f32 to vector<1x128xf32>
    %127 = arith.mulf %0, %126 : vector<1x128xf32>
    %c9 = arith.constant 9 : index
    %128 = memref.load %arg1[%c9] : memref<87xf32, #tpu.memory_space<smem>>
    %129 = vector.broadcast %128 : f32 to vector<1x128xf32>
    %130 = arith.mulf %1, %129 : vector<1x128xf32>
    %131 = arith.addf %127, %130 : vector<1x128xf32>
    %c15 = arith.constant 15 : index
    %132 = memref.load %arg1[%c15] : memref<87xf32, #tpu.memory_space<smem>>
    %133 = vector.broadcast %132 : f32 to vector<1x128xf32>
    %134 = arith.mulf %2, %133 : vector<1x128xf32>
    %135 = arith.addf %131, %134 : vector<1x128xf32>
    %c21 = arith.constant 21 : index
    %136 = memref.load %arg1[%c21] : memref<87xf32, #tpu.memory_space<smem>>
    %137 = vector.broadcast %136 : f32 to vector<1x128xf32>
    %138 = arith.mulf %3, %137 : vector<1x128xf32>
    %139 = arith.addf %135, %138 : vector<1x128xf32>
    %c27 = arith.constant 27 : index
    %140 = memref.load %arg1[%c27] : memref<87xf32, #tpu.memory_space<smem>>
    %141 = vector.broadcast %140 : f32 to vector<1x128xf32>
    %142 = arith.mulf %4, %141 : vector<1x128xf32>
    %143 = arith.addf %139, %142 : vector<1x128xf32>
    %c33 = arith.constant 33 : index
    %144 = memref.load %arg1[%c33] : memref<87xf32, #tpu.memory_space<smem>>
    %145 = vector.broadcast %144 : f32 to vector<1x128xf32>
    %146 = arith.mulf %5, %145 : vector<1x128xf32>
    %147 = arith.addf %143, %146 : vector<1x128xf32>
    %c39 = arith.constant 39 : index
    %148 = memref.load %arg1[%c39] : memref<87xf32, #tpu.memory_space<smem>>
    %149 = vector.broadcast %148 : f32 to vector<1x128xf32>
    %150 = arith.mulf %6, %149 : vector<1x128xf32>
    %151 = arith.addf %147, %150 : vector<1x128xf32>
    %c45 = arith.constant 45 : index
    %152 = memref.load %arg1[%c45] : memref<87xf32, #tpu.memory_space<smem>>
    %153 = vector.broadcast %152 : f32 to vector<1x128xf32>
    %154 = arith.mulf %7, %153 : vector<1x128xf32>
    %155 = arith.addf %151, %154 : vector<1x128xf32>
    %c51 = arith.constant 51 : index
    %156 = memref.load %arg1[%c51] : memref<87xf32, #tpu.memory_space<smem>>
    %157 = vector.broadcast %156 : f32 to vector<1x128xf32>
    %158 = arith.addf %155, %157 : vector<1x128xf32>
    %159 = arith.negf %158 : vector<1x128xf32>
    %160 = math.exp %159 : vector<1x128xf32>
    %cst_16 = arith.constant 1.000000e+00 : f32
    %161 = vector.broadcast %cst_16 : f32 to vector<1x128xf32>
    %162 = arith.addf %161, %160 : vector<1x128xf32>
    %163 = arith.divf %161, %162 : vector<1x128xf32>
    %c4_17 = arith.constant 4 : index
    %164 = memref.load %arg1[%c4_17] : memref<87xf32, #tpu.memory_space<smem>>
    %165 = vector.broadcast %164 : f32 to vector<1x128xf32>
    %166 = arith.mulf %0, %165 : vector<1x128xf32>
    %c10 = arith.constant 10 : index
    %167 = memref.load %arg1[%c10] : memref<87xf32, #tpu.memory_space<smem>>
    %168 = vector.broadcast %167 : f32 to vector<1x128xf32>
    %169 = arith.mulf %1, %168 : vector<1x128xf32>
    %170 = arith.addf %166, %169 : vector<1x128xf32>
    %c16 = arith.constant 16 : index
    %171 = memref.load %arg1[%c16] : memref<87xf32, #tpu.memory_space<smem>>
    %172 = vector.broadcast %171 : f32 to vector<1x128xf32>
    %173 = arith.mulf %2, %172 : vector<1x128xf32>
    %174 = arith.addf %170, %173 : vector<1x128xf32>
    %c22 = arith.constant 22 : index
    %175 = memref.load %arg1[%c22] : memref<87xf32, #tpu.memory_space<smem>>
    %176 = vector.broadcast %175 : f32 to vector<1x128xf32>
    %177 = arith.mulf %3, %176 : vector<1x128xf32>
    %178 = arith.addf %174, %177 : vector<1x128xf32>
    %c28 = arith.constant 28 : index
    %179 = memref.load %arg1[%c28] : memref<87xf32, #tpu.memory_space<smem>>
    %180 = vector.broadcast %179 : f32 to vector<1x128xf32>
    %181 = arith.mulf %4, %180 : vector<1x128xf32>
    %182 = arith.addf %178, %181 : vector<1x128xf32>
    %c34 = arith.constant 34 : index
    %183 = memref.load %arg1[%c34] : memref<87xf32, #tpu.memory_space<smem>>
    %184 = vector.broadcast %183 : f32 to vector<1x128xf32>
    %185 = arith.mulf %5, %184 : vector<1x128xf32>
    %186 = arith.addf %182, %185 : vector<1x128xf32>
    %c40 = arith.constant 40 : index
    %187 = memref.load %arg1[%c40] : memref<87xf32, #tpu.memory_space<smem>>
    %188 = vector.broadcast %187 : f32 to vector<1x128xf32>
    %189 = arith.mulf %6, %188 : vector<1x128xf32>
    %190 = arith.addf %186, %189 : vector<1x128xf32>
    %c46 = arith.constant 46 : index
    %191 = memref.load %arg1[%c46] : memref<87xf32, #tpu.memory_space<smem>>
    %192 = vector.broadcast %191 : f32 to vector<1x128xf32>
    %193 = arith.mulf %7, %192 : vector<1x128xf32>
    %194 = arith.addf %190, %193 : vector<1x128xf32>
    %c52 = arith.constant 52 : index
    %195 = memref.load %arg1[%c52] : memref<87xf32, #tpu.memory_space<smem>>
    %196 = vector.broadcast %195 : f32 to vector<1x128xf32>
    %197 = arith.addf %194, %196 : vector<1x128xf32>
    %198 = arith.negf %197 : vector<1x128xf32>
    %199 = math.exp %198 : vector<1x128xf32>
    %cst_18 = arith.constant 1.000000e+00 : f32
    %200 = vector.broadcast %cst_18 : f32 to vector<1x128xf32>
    %201 = arith.addf %200, %199 : vector<1x128xf32>
    %202 = arith.divf %200, %201 : vector<1x128xf32>
    %c5_19 = arith.constant 5 : index
    %203 = memref.load %arg1[%c5_19] : memref<87xf32, #tpu.memory_space<smem>>
    %204 = vector.broadcast %203 : f32 to vector<1x128xf32>
    %205 = arith.mulf %0, %204 : vector<1x128xf32>
    %c11 = arith.constant 11 : index
    %206 = memref.load %arg1[%c11] : memref<87xf32, #tpu.memory_space<smem>>
    %207 = vector.broadcast %206 : f32 to vector<1x128xf32>
    %208 = arith.mulf %1, %207 : vector<1x128xf32>
    %209 = arith.addf %205, %208 : vector<1x128xf32>
    %c17 = arith.constant 17 : index
    %210 = memref.load %arg1[%c17] : memref<87xf32, #tpu.memory_space<smem>>
    %211 = vector.broadcast %210 : f32 to vector<1x128xf32>
    %212 = arith.mulf %2, %211 : vector<1x128xf32>
    %213 = arith.addf %209, %212 : vector<1x128xf32>
    %c23 = arith.constant 23 : index
    %214 = memref.load %arg1[%c23] : memref<87xf32, #tpu.memory_space<smem>>
    %215 = vector.broadcast %214 : f32 to vector<1x128xf32>
    %216 = arith.mulf %3, %215 : vector<1x128xf32>
    %217 = arith.addf %213, %216 : vector<1x128xf32>
    %c29 = arith.constant 29 : index
    %218 = memref.load %arg1[%c29] : memref<87xf32, #tpu.memory_space<smem>>
    %219 = vector.broadcast %218 : f32 to vector<1x128xf32>
    %220 = arith.mulf %4, %219 : vector<1x128xf32>
    %221 = arith.addf %217, %220 : vector<1x128xf32>
    %c35 = arith.constant 35 : index
    %222 = memref.load %arg1[%c35] : memref<87xf32, #tpu.memory_space<smem>>
    %223 = vector.broadcast %222 : f32 to vector<1x128xf32>
    %224 = arith.mulf %5, %223 : vector<1x128xf32>
    %225 = arith.addf %221, %224 : vector<1x128xf32>
    %c41 = arith.constant 41 : index
    %226 = memref.load %arg1[%c41] : memref<87xf32, #tpu.memory_space<smem>>
    %227 = vector.broadcast %226 : f32 to vector<1x128xf32>
    %228 = arith.mulf %6, %227 : vector<1x128xf32>
    %229 = arith.addf %225, %228 : vector<1x128xf32>
    %c47 = arith.constant 47 : index
    %230 = memref.load %arg1[%c47] : memref<87xf32, #tpu.memory_space<smem>>
    %231 = vector.broadcast %230 : f32 to vector<1x128xf32>
    %232 = arith.mulf %7, %231 : vector<1x128xf32>
    %233 = arith.addf %229, %232 : vector<1x128xf32>
    %c53 = arith.constant 53 : index
    %234 = memref.load %arg1[%c53] : memref<87xf32, #tpu.memory_space<smem>>
    %235 = vector.broadcast %234 : f32 to vector<1x128xf32>
    %236 = arith.addf %233, %235 : vector<1x128xf32>
    %237 = arith.negf %236 : vector<1x128xf32>
    %238 = math.exp %237 : vector<1x128xf32>
    %cst_20 = arith.constant 1.000000e+00 : f32
    %239 = vector.broadcast %cst_20 : f32 to vector<1x128xf32>
    %240 = arith.addf %239, %238 : vector<1x128xf32>
    %241 = arith.divf %239, %240 : vector<1x128xf32>
    %c54 = arith.constant 54 : index
    %242 = memref.load %arg1[%c54] : memref<87xf32, #tpu.memory_space<smem>>
    %243 = vector.broadcast %242 : f32 to vector<1x128xf32>
    %244 = arith.mulf %46, %243 : vector<1x128xf32>
    %c58 = arith.constant 58 : index
    %245 = memref.load %arg1[%c58] : memref<87xf32, #tpu.memory_space<smem>>
    %246 = vector.broadcast %245 : f32 to vector<1x128xf32>
    %247 = arith.mulf %85, %246 : vector<1x128xf32>
    %248 = arith.addf %244, %247 : vector<1x128xf32>
    %c62 = arith.constant 62 : index
    %249 = memref.load %arg1[%c62] : memref<87xf32, #tpu.memory_space<smem>>
    %250 = vector.broadcast %249 : f32 to vector<1x128xf32>
    %251 = arith.mulf %124, %250 : vector<1x128xf32>
    %252 = arith.addf %248, %251 : vector<1x128xf32>
    %c66 = arith.constant 66 : index
    %253 = memref.load %arg1[%c66] : memref<87xf32, #tpu.memory_space<smem>>
    %254 = vector.broadcast %253 : f32 to vector<1x128xf32>
    %255 = arith.mulf %163, %254 : vector<1x128xf32>
    %256 = arith.addf %252, %255 : vector<1x128xf32>
    %c70 = arith.constant 70 : index
    %257 = memref.load %arg1[%c70] : memref<87xf32, #tpu.memory_space<smem>>
    %258 = vector.broadcast %257 : f32 to vector<1x128xf32>
    %259 = arith.mulf %202, %258 : vector<1x128xf32>
    %260 = arith.addf %256, %259 : vector<1x128xf32>
    %c74 = arith.constant 74 : index
    %261 = memref.load %arg1[%c74] : memref<87xf32, #tpu.memory_space<smem>>
    %262 = vector.broadcast %261 : f32 to vector<1x128xf32>
    %263 = arith.mulf %241, %262 : vector<1x128xf32>
    %264 = arith.addf %260, %263 : vector<1x128xf32>
    %c78 = arith.constant 78 : index
    %265 = memref.load %arg1[%c78] : memref<87xf32, #tpu.memory_space<smem>>
    %266 = vector.broadcast %265 : f32 to vector<1x128xf32>
    %267 = arith.addf %264, %266 : vector<1x128xf32>
    %268 = arith.negf %267 : vector<1x128xf32>
    %269 = math.exp %268 : vector<1x128xf32>
    %cst_21 = arith.constant 1.000000e+00 : f32
    %270 = vector.broadcast %cst_21 : f32 to vector<1x128xf32>
    %271 = arith.addf %270, %269 : vector<1x128xf32>
    %272 = arith.divf %270, %271 : vector<1x128xf32>
    %c55 = arith.constant 55 : index
    %273 = memref.load %arg1[%c55] : memref<87xf32, #tpu.memory_space<smem>>
    %274 = vector.broadcast %273 : f32 to vector<1x128xf32>
    %275 = arith.mulf %46, %274 : vector<1x128xf32>
    %c59 = arith.constant 59 : index
    %276 = memref.load %arg1[%c59] : memref<87xf32, #tpu.memory_space<smem>>
    %277 = vector.broadcast %276 : f32 to vector<1x128xf32>
    %278 = arith.mulf %85, %277 : vector<1x128xf32>
    %279 = arith.addf %275, %278 : vector<1x128xf32>
    %c63 = arith.constant 63 : index
    %280 = memref.load %arg1[%c63] : memref<87xf32, #tpu.memory_space<smem>>
    %281 = vector.broadcast %280 : f32 to vector<1x128xf32>
    %282 = arith.mulf %124, %281 : vector<1x128xf32>
    %283 = arith.addf %279, %282 : vector<1x128xf32>
    %c67 = arith.constant 67 : index
    %284 = memref.load %arg1[%c67] : memref<87xf32, #tpu.memory_space<smem>>
    %285 = vector.broadcast %284 : f32 to vector<1x128xf32>
    %286 = arith.mulf %163, %285 : vector<1x128xf32>
    %287 = arith.addf %283, %286 : vector<1x128xf32>
    %c71 = arith.constant 71 : index
    %288 = memref.load %arg1[%c71] : memref<87xf32, #tpu.memory_space<smem>>
    %289 = vector.broadcast %288 : f32 to vector<1x128xf32>
    %290 = arith.mulf %202, %289 : vector<1x128xf32>
    %291 = arith.addf %287, %290 : vector<1x128xf32>
    %c75 = arith.constant 75 : index
    %292 = memref.load %arg1[%c75] : memref<87xf32, #tpu.memory_space<smem>>
    %293 = vector.broadcast %292 : f32 to vector<1x128xf32>
    %294 = arith.mulf %241, %293 : vector<1x128xf32>
    %295 = arith.addf %291, %294 : vector<1x128xf32>
    %c79 = arith.constant 79 : index
    %296 = memref.load %arg1[%c79] : memref<87xf32, #tpu.memory_space<smem>>
    %297 = vector.broadcast %296 : f32 to vector<1x128xf32>
    %298 = arith.addf %295, %297 : vector<1x128xf32>
    %299 = arith.negf %298 : vector<1x128xf32>
    %300 = math.exp %299 : vector<1x128xf32>
    %cst_22 = arith.constant 1.000000e+00 : f32
    %301 = vector.broadcast %cst_22 : f32 to vector<1x128xf32>
    %302 = arith.addf %301, %300 : vector<1x128xf32>
    %303 = arith.divf %301, %302 : vector<1x128xf32>
    %c56 = arith.constant 56 : index
    %304 = memref.load %arg1[%c56] : memref<87xf32, #tpu.memory_space<smem>>
    %305 = vector.broadcast %304 : f32 to vector<1x128xf32>
    %306 = arith.mulf %46, %305 : vector<1x128xf32>
    %c60 = arith.constant 60 : index
    %307 = memref.load %arg1[%c60] : memref<87xf32, #tpu.memory_space<smem>>
    %308 = vector.broadcast %307 : f32 to vector<1x128xf32>
    %309 = arith.mulf %85, %308 : vector<1x128xf32>
    %310 = arith.addf %306, %309 : vector<1x128xf32>
    %c64 = arith.constant 64 : index
    %311 = memref.load %arg1[%c64] : memref<87xf32, #tpu.memory_space<smem>>
    %312 = vector.broadcast %311 : f32 to vector<1x128xf32>
    %313 = arith.mulf %124, %312 : vector<1x128xf32>
    %314 = arith.addf %310, %313 : vector<1x128xf32>
    %c68 = arith.constant 68 : index
    %315 = memref.load %arg1[%c68] : memref<87xf32, #tpu.memory_space<smem>>
    %316 = vector.broadcast %315 : f32 to vector<1x128xf32>
    %317 = arith.mulf %163, %316 : vector<1x128xf32>
    %318 = arith.addf %314, %317 : vector<1x128xf32>
    %c72 = arith.constant 72 : index
    %319 = memref.load %arg1[%c72] : memref<87xf32, #tpu.memory_space<smem>>
    %320 = vector.broadcast %319 : f32 to vector<1x128xf32>
    %321 = arith.mulf %202, %320 : vector<1x128xf32>
    %322 = arith.addf %318, %321 : vector<1x128xf32>
    %c76 = arith.constant 76 : index
    %323 = memref.load %arg1[%c76] : memref<87xf32, #tpu.memory_space<smem>>
    %324 = vector.broadcast %323 : f32 to vector<1x128xf32>
    %325 = arith.mulf %241, %324 : vector<1x128xf32>
    %326 = arith.addf %322, %325 : vector<1x128xf32>
    %c80 = arith.constant 80 : index
    %327 = memref.load %arg1[%c80] : memref<87xf32, #tpu.memory_space<smem>>
    %328 = vector.broadcast %327 : f32 to vector<1x128xf32>
    %329 = arith.addf %326, %328 : vector<1x128xf32>
    %330 = arith.negf %329 : vector<1x128xf32>
    %331 = math.exp %330 : vector<1x128xf32>
    %cst_23 = arith.constant 1.000000e+00 : f32
    %332 = vector.broadcast %cst_23 : f32 to vector<1x128xf32>
    %333 = arith.addf %332, %331 : vector<1x128xf32>
    %334 = arith.divf %332, %333 : vector<1x128xf32>
    %c57 = arith.constant 57 : index
    %335 = memref.load %arg1[%c57] : memref<87xf32, #tpu.memory_space<smem>>
    %336 = vector.broadcast %335 : f32 to vector<1x128xf32>
    %337 = arith.mulf %46, %336 : vector<1x128xf32>
    %c61 = arith.constant 61 : index
    %338 = memref.load %arg1[%c61] : memref<87xf32, #tpu.memory_space<smem>>
    %339 = vector.broadcast %338 : f32 to vector<1x128xf32>
    %340 = arith.mulf %85, %339 : vector<1x128xf32>
    %341 = arith.addf %337, %340 : vector<1x128xf32>
    %c65 = arith.constant 65 : index
    %342 = memref.load %arg1[%c65] : memref<87xf32, #tpu.memory_space<smem>>
    %343 = vector.broadcast %342 : f32 to vector<1x128xf32>
    %344 = arith.mulf %124, %343 : vector<1x128xf32>
    %345 = arith.addf %341, %344 : vector<1x128xf32>
    %c69 = arith.constant 69 : index
    %346 = memref.load %arg1[%c69] : memref<87xf32, #tpu.memory_space<smem>>
    %347 = vector.broadcast %346 : f32 to vector<1x128xf32>
    %348 = arith.mulf %163, %347 : vector<1x128xf32>
    %349 = arith.addf %345, %348 : vector<1x128xf32>
    %c73 = arith.constant 73 : index
    %350 = memref.load %arg1[%c73] : memref<87xf32, #tpu.memory_space<smem>>
    %351 = vector.broadcast %350 : f32 to vector<1x128xf32>
    %352 = arith.mulf %202, %351 : vector<1x128xf32>
    %353 = arith.addf %349, %352 : vector<1x128xf32>
    %c77 = arith.constant 77 : index
    %354 = memref.load %arg1[%c77] : memref<87xf32, #tpu.memory_space<smem>>
    %355 = vector.broadcast %354 : f32 to vector<1x128xf32>
    %356 = arith.mulf %241, %355 : vector<1x128xf32>
    %357 = arith.addf %353, %356 : vector<1x128xf32>
    %c81 = arith.constant 81 : index
    %358 = memref.load %arg1[%c81] : memref<87xf32, #tpu.memory_space<smem>>
    %359 = vector.broadcast %358 : f32 to vector<1x128xf32>
    %360 = arith.addf %357, %359 : vector<1x128xf32>
    %361 = arith.negf %360 : vector<1x128xf32>
    %362 = math.exp %361 : vector<1x128xf32>
    %cst_24 = arith.constant 1.000000e+00 : f32
    %363 = vector.broadcast %cst_24 : f32 to vector<1x128xf32>
    %364 = arith.addf %363, %362 : vector<1x128xf32>
    %365 = arith.divf %363, %364 : vector<1x128xf32>
    %c82 = arith.constant 82 : index
    %366 = memref.load %arg1[%c82] : memref<87xf32, #tpu.memory_space<smem>>
    %367 = vector.broadcast %366 : f32 to vector<1x128xf32>
    %368 = arith.mulf %272, %367 : vector<1x128xf32>
    %c83 = arith.constant 83 : index
    %369 = memref.load %arg1[%c83] : memref<87xf32, #tpu.memory_space<smem>>
    %370 = vector.broadcast %369 : f32 to vector<1x128xf32>
    %371 = arith.mulf %303, %370 : vector<1x128xf32>
    %372 = arith.addf %368, %371 : vector<1x128xf32>
    %c84 = arith.constant 84 : index
    %373 = memref.load %arg1[%c84] : memref<87xf32, #tpu.memory_space<smem>>
    %374 = vector.broadcast %373 : f32 to vector<1x128xf32>
    %375 = arith.mulf %334, %374 : vector<1x128xf32>
    %376 = arith.addf %372, %375 : vector<1x128xf32>
    %c85 = arith.constant 85 : index
    %377 = memref.load %arg1[%c85] : memref<87xf32, #tpu.memory_space<smem>>
    %378 = vector.broadcast %377 : f32 to vector<1x128xf32>
    %379 = arith.mulf %365, %378 : vector<1x128xf32>
    %380 = arith.addf %376, %379 : vector<1x128xf32>
    %c86 = arith.constant 86 : index
    %381 = memref.load %arg1[%c86] : memref<87xf32, #tpu.memory_space<smem>>
    %382 = vector.broadcast %381 : f32 to vector<1x128xf32>
    %383 = arith.addf %380, %382 : vector<1x128xf32>
    %384 = arith.negf %383 : vector<1x128xf32>
    %385 = math.exp %384 : vector<1x128xf32>
    %cst_25 = arith.constant 1.000000e+00 : f32
    %386 = vector.broadcast %cst_25 : f32 to vector<1x128xf32>
    %387 = arith.addf %386, %385 : vector<1x128xf32>
    %388 = arith.divf %386, %387 : vector<1x128xf32>
    %c0_26 = arith.constant 0 : index
    %c0_27 = arith.constant 0 : index
    %389 = vector.load %arg3[%c0_26, %c0_27] : memref<1x128xf32, #tpu.memory_space<vmem>>, vector<1x128xf32>
    tpu.vector_store %arg3[%c0_26, %c0_27], %388 {strides = array<i32>} : memref<1x128xf32, #tpu.memory_space<vmem>>, vector<1x128xf32>,
    return
  }
  func.func @transform_0(%arg0: i32) -> i32 {
    %c0_i32 = arith.constant 0 : i32
    %c0_i32_0 = arith.constant 0 : i32
    return %c0_i32 : i32
  }
  func.func @transform_1(%arg0: i32) -> (i32, i32) {
    %c0_i32 = arith.constant 0 : i32
    %c0_i32_0 = arith.constant 0 : i32
    return %c0_i32, %arg0 : i32, i32
  }
  func.func @transform_2(%arg0: i32) -> (i32, i32) {
    %c0_i32 = arith.constant 0 : i32
    %c0_i32_0 = arith.constant 0 : i32
    return %c0_i32, %arg0 : i32, i32
  }
}

</mosaic_0001>

<bundles_post_ra>
// kernel: mlp_forward.1
= control target key start
LH: loop header
LB: loop body
LE: loop exit
PB: predicated region body
PF: predicated region fallthrough
CT: control target
= control target key end

     0   :  { %7 = vsyncpa [#allocation5], 0  ;;  %s1499_s0 = inlined_call_operand.vmem [shape: f32[87], index: 0, kind: input, shape index: {}]   ;;  %s1500_s1 = inlined_call_operand.hbm [shape: f32[8,512], index: 1, kind: input, shape index: {}]   ;;  %s1501_s2 = inlined_call_operand.hbm [shape: f32[1,512], index: 2, kind: output, shape index: {}]  }
   0x1   :  { %8 = vsyncpa [#allocation3], 0 }
   0x2   :  { %10 = vsyncpa [#allocation3 + $0x1], 0 }
   0x3   :  { %11 = vsyncpa [#allocation4], 0 }
   0x4   :  { %13 = vsyncpa [#allocation4 + $0x1], 0  ;;  %s1009_s9 = smov 0   ;;  %s1011_s10 = smov 0  }
   0x5   :  { %s1013_s11 = smov 0   ;;  %s1015_s12 = smov 0  }
   0x6 LB: > { %s1030_s13 = sadd.s32 4294967295, %s989_s12   ;;  %s664_s14 = sadd.s32 4294967294, %s989_s12   ;;  %s989_s12 = sphi %s1015_s12, %s1521_s12   ;;  %s985_s11 = sphi %s1013_s11, %s1520_s11   ;;  %s981_s10 = sphi %s1011_s10, %s1519_s10   ;;  %s977_s9 = sphi %s1009_s9, %s1518_s9  }
   0x7   : > { %p60_p0 = scmp.ne.s32.totalorder %s981_s10, %s977_s9  ;;  %p1502_p1 = scmp.eq.s32.totalorder %s1030_s13, 0 }
   0x8   : > { %p90_p3 = scmp.eq.s32.totalorder %s664_s14, 3  ;;  %p665_p5 = scmp.ge.s32.totalorder %s989_s12, 1 }
   0x9   : > { %p1039_p4 = por %p1502_p1, %p60_p0  ;;  %p97_p7 = scmp.lt.s32.totalorder %s989_s12, 5 }
   0xa   : > { %p1044_p6 = por %p90_p3, %p60_p0  ;;  %s110_s19 = sshll.u32 %s1499_s0, 4  ;;  %s111_s19 = int_to_ptr.vmem [resolvable:$true] %s110_s19 }
   0xb   : > { %s1505_s15 = scalar_select %p1039_p4, 1, 0 }
   0xc   : > { %s1506_s16 = scalar_select %p1044_p6, 1, 0 }
   0xd   : > { %p1052_p8 = pnand %p665_p5, %p97_p7  ;;  %s1059_s21 = sadd.s32 1, %s989_s12  }
   0xe   : > { %s44_s23 = ssub.s32 %s989_s12, %s1059_s21  ;;  %s47_s25 = sadd.s32 1, %s985_s11 }
   0xf   : > { %p781_p9 = pneg %p1052_p8  ;;  %p1069_p11 = scmp.eq.s32.totalorder %s44_s23, 0 }
  0x10   : > { %p54_p12 = scmp.ne.s32.totalorder %s985_s11, %s981_s10  ;;  %s874_s26 = scalar_lea.vmem %s111_s19, 16 }
  0x11   : > { %p1063_p10 = pnand %p781_p9, %p1502_p1  ;;  %p875_p13 = scmp.ne.s32.totalorder %s111_s19, %s874_s26 }
  0x12   : > { %p882_p7 = scmp.lt.s32.totalorder %s111_s19, %s111_s19  ;;  %p883_p2 = scmp.lt.s32.totalorder %s874_s26, %s874_s26 }
  0x13   : > { %p876_p0 = pneg %p1063_p10 }
  0x14   : > { %p884_p9 = por %p883_p2, %p882_p7 }
  0x15   : > { %p877_p3 = pnand %p876_p0, %p875_p13 }
  0x17   : > { %p878_p5 = pneg %p877_p3 }
  0x19   : > { %p885_p1 = pnand %p884_p9, %p878_p5 }
  0x1b   : > { %888 = shalt.err (!%p885_p1)
}
  0x1c   : > { %s991_s27 = smov [#allocation2]   ;;  %p55_p2 = scmp.eq.s32.totalorder %s989_s12, 0 }
  0x1d   : > { %784 = dma.vmem_to_smem (!%p1063_p10), %s111_s19, 16, %s991_s27, [#allocation5]  }
  0x1e   : > { %s1083_s28 = scalar_select %p1069_p11, %s985_s11, %s47_s25  }
  0x1f   : > { %p1510_p1 = scmp.eq.s32.totalorder %s1030_s13, 3  ;;  %p794_p0 = scmp.lt.s32.totalorder %s989_s12, 4 }
  0x20   : > { %s121_s30 = sand.u32 1, %s985_s11   ;;  %p56_p3 = por %p55_p2, %p54_p12 }
  0x21   : > { %p1091_p13 = por %p1510_p1, %p54_p12  ;;  %s668_s3 = sshll.u32 %s121_s30, 3 }
  0x22   : > { %s669_s4 = sshll.u32 %s989_s12, 7  ;;  %s125_s8 = scalar_lea.vmem [#allocation6], %s668_s3 }
  0x23   : > { %s1511_s29 = scalar_select %p1091_p13, 1, 0 }
  0x24   : > { %s1104_s7 = scalar_lea.hbm %s1500_s1, %s669_s4  ;;  %s132_s14 = sshll.u32 %s125_s8, 4  ;;  %s1110_s14 = int_to_ptr.vmem [resolvable:$true] %s132_s14 }
  0x25   : > { %p1106_p10 = pnand %p794_p0, %p56_p3  ;;  %s122_s18 = scalar_lea.sflag [#allocation3], %s121_s30 }
  0x26   : > { %s889_s19 = scalar_lea.hbm %s1104_s7, 128  ;;  %s894_s24 = scalar_lea.hbm %s1500_s1, 512 }
  0x27   : > { %p890_p11 = scmp.ne.s32.totalorder %s1104_s7, %s889_s19  ;;  %p891_p12 = pneg %p1106_p10 }
  0x28   : > { %p895_p9 = scmp.lt.u32.totalorder %s1104_s7, %s1500_s1  ;;  %p896_p2 = scmp.lt.u32.totalorder %s894_s24, %s889_s19 }
  0x29   : > { %p892_p5 = pnand %p891_p12, %p890_p11  ;;  %p898_p0 = scmp.lt.u32.totalorder %s889_s19, %s1104_s7 }
  0x2a   : > { %p897_p1 = por %p896_p2, %p895_p9 }
  0x2b   : > { %p893_p7 = pneg %p892_p5 }
  0x2c   : > { %p899_p3 = por %p898_p0, %p897_p1 }
  0x2e   : > { %p900_p6 = pnand %p899_p3, %p893_p7 }
  0x30   : > { %903 = shalt.err (!%p900_p6)
}
  0x31   : > { %s904_s27 = scalar_lea.vmem %s1110_s14, 128  ;;  %s992_s30 = smov [#allocation6]  }
  0x32   : > { %p905_p11 = scmp.ne.s32.totalorder %s1110_s14, %s904_s27  ;;  %s909_s3 = sshll.u32 %s992_s30, 4  ;;  %s910_s3 = int_to_ptr.vmem [resolvable:$false] %s909_s3 }
  0x33   : > { %s911_s4 = scalar_lea.vmem %s910_s3, 256  ;;  %p912_p4 = scmp.lt.s32.totalorder %s1110_s14, %s910_s3 }
  0x34   : > { %p907_p5 = pnand %p905_p11, %p891_p12  ;;  %p913_p9 = scmp.lt.s32.totalorder %s911_s4, %s904_s27 }
  0x36   : > { %p908_p13 = pneg %p907_p5  ;;  %p914_p2 = por %p913_p9, %p912_p4 }
  0x38   : > { %p915_p1 = pnand %p914_p2, %p908_p13 }
  0x3a   : > { %918 = shalt.err (!%p915_p1)
}
  0x3b   : > { %788 = dma.hbm_to_vmem [thread:$0]  (!%p1106_p10), %s1104_s7, 128, %s1110_s14, %s122_s18  }
  0x3c   : > { %141 = sbr.rel (%p1052_p8) target bundleno = 239 (0xef), region = 28  ;;  %p1513_p6 = scmp.eq.s32.totalorder (!%p1052_p8), %s1030_s13, 0 }
  0x43   : > { %964 = dma.done.wait (%p1513_p6), [#allocation5], 16   ;;  %p1514_p12 = pmov %p1513_p6 }
  0x44   : > { %s1144_s5 = sand.u32 1, %s981_s10   ;;  %p1515_p4 = scmp.ne.s32.totalorder %s1505_s15, 0 }
  0x45   : > { %966 = vsyncadd (%p1514_p12), [#allocation5], 4294967280  ;;  %s672_s6 = sshll.u32 %s1144_s5, 3  ;;  %s148_s8 = scalar_lea.sflag [#allocation3], %s1144_s5 }
  0x46   : > { %s1148_s17 = scalar_lea.vmem [#allocation6], %s672_s6 }
  0x47   : > { %968 = dma.done.wait (%p1515_p4), %s148_s8, 128  }
  0x48   : > { %970 = vsyncadd (%p1515_p4), %s148_s8, 4294967168 }
  0x49   : > { %156 = sfence }
  0x4a   : > { %s180_s20 = sld [smem:[#allocation2]]  ;;  %s673_s7 = sld [smem:[#allocation2 + $0x6]]  ;;  %v1157_v0 = vld [vmem:[%s1148_s17] sm:$0x1]  ;;  %v1164_v1 = vld [vmem:[%s1148_s17 + $0x1] sm:$0x1] }
  0x4b   : > { %s674_s14 = sld [smem:[#allocation2 + $0xc]]  ;;  %s1154_s18 = sld [smem:[#allocation2 + $0x12]]  ;;  %v1171_v2 = vld [vmem:[%s1148_s17 + $0x2] sm:$0x1]  ;;  %v1178_v3 = vld [vmem:[%s1148_s17 + $0x3] sm:$0x1] }
  0x4c   : > { %s1159_s19 = sld [smem:[#allocation2 + $0x18]]  ;;  %s1161_s22 = sld [smem:[#allocation2 + $0x1e]]  ;;  %v1185_v4 = vld [vmem:[%s1148_s17 + $0x4] sm:$0x1]  ;;  %v1192_v7 = vld [vmem:[%s1148_s17 + $0x5] sm:$0x1] }
  0x4d   : > { %s1166_s15 = sld [smem:[#allocation2 + $0x24]]  ;;  %s1168_s23 = sld [smem:[#allocation2 + $0x2a]]  ;;  %v1202_v12 = vld [vmem:[%s1148_s17 + $0x6] sm:$0x1]  ;;  %v1216_v19 = vld [vmem:[%s1148_s17 + $0x7] sm:$0x1] }
  0x4e   : > { %s1173_s24 = sld [smem:[#allocation2 + $0x30]]  ;;  %s1175_s25 = sld [smem:[#allocation2 + $0x1]] }
  0x4f   : > { %s1180_s26 = sld [smem:[#allocation2 + $0x7]]  ;;  %s1182_s27 = sld [smem:[#allocation2 + $0xd]] }
  0x50   : > { %v181_v5 = vstv %s180_s20  ;;  %v184_v6 = vstv %s673_s7  ;;  %s1187_s30 = sld [smem:[#allocation2 + $0x13]]  ;;  %s1189_s3 = sld [smem:[#allocation2 + $0x19]] }
  0x51   : > { %v182_v8 = vmul.f32 %v181_v5, %v1157_v0  ;;  %v185_v9 = vmul.f32 %v184_v6, %v1164_v1  ;;  %v188_v10 = vstv %s674_s14  ;;  %v192_v11 = vstv %s1154_s18  ;;  %s1197_s4 = sld [smem:[#allocation2 + $0x1f]]  ;;  %s1199_s6 = sld [smem:[#allocation2 + $0x25]] }
  0x52   : > { %v189_v13 = vmul.f32 %v188_v10, %v1171_v2  ;;  %v196_v14 = vstv %s1159_s19  ;;  %v200_v15 = vstv %s1161_s22  ;;  %s1207_s8 = sld [smem:[#allocation2 + $0x2b]]  ;;  %v193_v17 = vmul.f32 %v192_v11, %v1178_v3  ;;  %s1211_s20 = sld [smem:[#allocation2 + $0x2]] }
  0x53   : > { %v186_v16 = vadd.f32 %v185_v9, %v182_v8  ;;  %v204_v18 = vstv %s1166_s15  ;;  %s1213_s7 = sld [smem:[#allocation2 + $0x8]]  ;;  %v197_v20 = vmul.f32 %v196_v14, %v1185_v4  ;;  %v201_v21 = vmul.f32 %v200_v15, %v1192_v7  ;;  %s1222_s14 = sld [smem:[#allocation2 + $0xe]] }
  0x54   : > { %v208_v22 = vstv %s1168_s23  ;;  %v221_v23 = vstv %s1175_s25  ;;  %s1224_s18 = sld [smem:[#allocation2 + $0x14]]  ;;  %v205_v25 = vmul.f32 %v204_v18, %v1202_v12  ;;  %s1229_s17 = sld [smem:[#allocation2 + $0x31]]  ;;  %v212_v34 = vstv %s1173_s24 }
  0x55   : > { %v190_v24 = vadd.f32 %v189_v13, %v186_v16  ;;  %v222_v26 = vmul.f32 %v221_v23, %v1157_v0  ;;  %v224_v27 = vstv %s1180_s26  ;;  %s1231_s19 = sld [smem:[#allocation2 + $0x1a]]  ;;  %v228_v29 = vstv %s1182_s27  ;;  %s1237_s22 = sld [smem:[#allocation2 + $0x20]] }
  0x56   : > { %v225_v28 = vmul.f32 %v224_v27, %v1164_v1  ;;  %v232_v30 = vstv %s1187_s30  ;;  %v236_v31 = vstv %s1189_s3  ;;  %s1239_s15 = sld [smem:[#allocation2 + $0x26]]  ;;  %v209_v33 = vmul.f32 %v208_v22, %v1216_v19  ;;  %s1244_s23 = sld [smem:[#allocation2 + $0x2c]] }
  0x57   : > { %v194_v32 = vadd.f32 %v193_v17, %v190_v24  ;;  %v229_v35 = vmul.f32 %v228_v29, %v1171_v2  ;;  %v233_v37 = vmul.f32 %v232_v30, %v1178_v3  ;;  %v240_v38 = vstv %s1197_s4  ;;  %s1249_s25 = sld [smem:[#allocation2 + $0x3]]  ;;  %s1254_s24 = sld [smem:[#allocation2 + $0x9]] }
  0x58   : > { %v226_v36 = vadd.f32 %v225_v28, %v222_v26  ;;  %v244_v39 = vstv %s1199_s6  ;;  %v237_v41 = vmul.f32 %v236_v31, %v1185_v4  ;;  %v241_v42 = vmul.f32 %v240_v38, %v1192_v7  ;;  %s1259_s26 = sld [smem:[#allocation2 + $0xf]]  ;;  %s1261_s27 = sld [smem:[#allocation2 + $0x15]] }
  0x59   : > { %v198_v40 = vadd.f32 %v197_v20, %v194_v32  ;;  %v248_v43 = vstv %s1207_s8  ;;  %v245_v45 = vmul.f32 %v244_v39, %v1202_v12  ;;  %v261_v46 = vstv %s1211_s20  ;;  %s1269_s30 = sld [smem:[#allocation2 + $0x1b]]  ;;  %s1271_s3 = sld [smem:[#allocation2 + $0x21]] }
  0x5a   : > { %v230_v44 = vadd.f32 %v229_v35, %v226_v36  ;;  %v264_v47 = vstv %s1213_s7  ;;  %v262_v49 = vmul.f32 %v261_v46, %v1157_v0  ;;  %v268_v51 = vstv %s1222_s14  ;;  %s1275_s4 = sld [smem:[#allocation2 + $0x32]]  ;;  %s1280_s6 = sld [smem:[#allocation2 + $0x27]] }
  0x5b   : > { %v202_v48 = vadd.f32 %v201_v21, %v198_v40  ;;  %v265_v50 = vmul.f32 %v264_v47, %v1164_v1  ;;  %v269_v53 = vmul.f32 %v268_v51, %v1171_v2  ;;  %v272_v54 = vstv %s1224_s18  ;;  %s1284_s8 = sld [smem:[#allocation2 + $0x2d]]  ;;  %s1289_s20 = sld [smem:[#allocation2 + $0x4]] }
  0x5c   : > { %v234_v52 = vadd.f32 %v233_v37, %v230_v44  ;;  %v276_v55 = vstv %s1231_s19  ;;  %v249_v57 = vmul.f32 %v248_v43, %v1216_v19  ;;  %v273_v59 = vmul.f32 %v272_v54, %v1178_v3  ;;  %s1291_s7 = sld [smem:[#allocation2 + $0xa]]  ;;  %s1295_s14 = sld [smem:[#allocation2 + $0x10]] }
  0x5d   : > { %v206_v56 = vadd.f32 %v205_v25, %v202_v48  ;;  %v266_v58 = vadd.f32 %v265_v50, %v262_v49  ;;  %v252_v61 = vstv %s1229_s17  ;;  %v280_v62 = vstv %s1237_s22  ;;  %s1300_s18 = sld [smem:[#allocation2 + $0x16]]  ;;  %s1304_s17 = sld [smem:[#allocation2 + $0x1c]] }
  0x5e   : > { %v238_v60 = vadd.f32 %v237_v41, %v234_v52  ;;  %v284_v63 = vstv %s1239_s15  ;;  %v277_v8 = vmul.f32 %v276_v55, %v1185_v4  ;;  %v288_v9 = vstv %s1244_s23  ;;  %s1308_s19 = sld [smem:[#allocation2 + $0x22]]  ;;  %s1312_s22 = sld [smem:[#allocation2 + $0x28]] }
  0x5f   : > { %v210_v5 = vadd.f32 %v209_v33, %v206_v56  ;;  %v270_v6 = vadd.f32 %v269_v53, %v266_v58  ;;  %v281_v11 = vmul.f32 %v280_v62, %v1192_v7  ;;  %v285_v13 = vmul.f32 %v284_v63, %v1202_v12  ;;  %s1316_s15 = sld [smem:[#allocation2 + $0x33]]  ;;  %s1318_s23 = sld [smem:[#allocation2 + $0x5]] }
  0x60   : > { %v242_v10 = vadd.f32 %v241_v42, %v238_v60  ;;  %v301_v14 = vstv %s1249_s25  ;;  %v304_v18 = vstv %s1254_s24  ;;  %v308_v22 = vstv %s1259_s26  ;;  %s1323_s25 = sld [smem:[#allocation2 + $0x2e]]  ;;  %s1327_s24 = sld [smem:[#allocation2 + $0xb]] }
  0x61   : > { %v213_v15 = vadd.f32 %v212_v34, %v210_v5  ;;  %v274_v16 = vadd.f32 %v273_v59, %v270_v6  ;;  %v302_v17 = vmul.f32 %v301_v14, %v1157_v0  ;;  %v305_v21 = vmul.f32 %v304_v18, %v1164_v1  ;;  %s1329_s26 = sld [smem:[#allocation2 + $0x11]]  ;;  %p1516_p13 = scmp.ne.s32.totalorder %s1511_s29, 0 }
  0x62   : > { %v246_v20 = vadd.f32 %v245_v45, %v242_v10  ;;  %v312_v23 = vstv %s1261_s27  ;;  %v309_v26 = vmul.f32 %v308_v22, %v1171_v2  ;;  %v316_v30 = vstv %s1269_s30  ;;  %s1334_s27 = sld [smem:[#allocation2 + $0x17]]  ;;  %s1338_s30 = sld [smem:[#allocation2 + $0x1d]] }
  0x63   : > { %v681_v24 = vmul.f32 -1.442695, %v213_v15  ;;  %v278_v25 = vadd.f32 %v277_v8, %v274_v16  ;;  %v313_v27 = vmul.f32 %v312_v23, %v1178_v3  ;;  %v306_v29 = vadd.f32 %v305_v21, %v302_v17 }
  0x64   : > { %v250_v28 = vadd.f32 %v249_v57, %v246_v20  ;;  %v320_v31 = vstv %s1271_s3  ;;  %v289_v33 = vmul.f32 %v288_v9, %v1216_v19  ;;  %v292_v34 = vstv %s1275_s4  ;;  %s1342_s3 = sld [smem:[#allocation2 + $0x23]]  ;;  %s1348_s4 = sld [smem:[#allocation2 + $0x34]] }
  0x65   : > { %830 = vpow2.f32 %v681_v24  ;;  %v282_v32 = vadd.f32 %v281_v11, %v278_v25  ;;  %v310_v36 = vadd.f32 %v309_v26, %v306_v29  ;;  %v317_v37 = vmul.f32 %v316_v30, %v1185_v4 }
  0x66   : > { %v253_v35 = vadd.f32 %v252_v61, %v250_v28  ;;  %v324_v38 = vstv %s1280_s6  ;;  %v321_v40 = vmul.f32 %v320_v31, %v1192_v7  ;;  %v328_v42 = vstv %s1284_s8  ;;  %s1353_s6 = sld [smem:[#allocation2 + $0x29]]  ;;  %s1357_s8 = sld [smem:[#allocation2 + $0x2f]] }
  0x67   : > { %v286_v39 = vadd.f32 %v285_v13, %v282_v32  ;;  %v325_v41 = vmul.f32 %v324_v38, %v1202_v12  ;;  %v314_v44 = vadd.f32 %v313_v27, %v310_v36  ;;  %v341_v45 = vstv %s1289_s20  ;;  %s730_s20 = sld [smem:[#allocation2 + $0x35]] }
  0x68   : > { %v691_v43 = vmul.f32 -1.442695, %v253_v35  ;;  %v344_v46 = vstv %s1291_s7  ;;  %v342_v48 = vmul.f32 %v341_v45, %v1157_v0  ;;  %v348_v50 = vstv %s1295_s14  ;;  %s1376_s7 = sld [smem:[#allocation2 + $0x36]]  ;;  %s1378_s14 = sld [smem:[#allocation2 + $0x3a]] }
  0x69   : > { %v290_v47 = vadd.f32 %v289_v33, %v286_v39  ;;  %v345_v49 = vmul.f32 %v344_v46, %v1164_v1  ;;  %v318_v51 = vadd.f32 %v317_v37, %v314_v44  ;;  %v349_v52 = vmul.f32 %v348_v50, %v1171_v2 }
  0x6a   : > { %832 = vpow2.f32 %v691_v43  ;;  %v352_v53 = vstv %s1300_s18  ;;  %v356_v57 = vstv %s1304_s17  ;;  %v329_v59 = vmul.f32 %v328_v42, %v1216_v19  ;;  %s1380_s18 = sld [smem:[#allocation2 + $0x37]]  ;;  %s1382_s17 = sld [smem:[#allocation2 + $0x38]] }
  0x6b   : > { %v293_v54 = vadd.f32 %v292_v34, %v290_v47  ;;  %v346_v55 = vadd.f32 %v345_v49, %v342_v48  ;;  %v353_v56 = vmul.f32 %v352_v53, %v1178_v3  ;;  %v322_v58 = vadd.f32 %v321_v40, %v318_v51 }
  0x6c   : > { %v360_v60 = vstv %s1308_s19  ;;  %v357_v63 = vmul.f32 %v356_v57, %v1185_v4  ;;  %v364_v5 = vstv %s1312_s22  ;;  %v332_v8 = vstv %s1316_s15  ;;  %s1384_s19 = sld [smem:[#allocation2 + $0x3b]]  ;;  %s1386_s22 = sld [smem:[#allocation2 + $0x3c]] }
  0x6d   : > { %v701_v61 = vmul.f32 -1.442695, %v293_v54  ;;  %v350_v62 = vadd.f32 %v349_v52, %v346_v55  ;;  %v326_v6 = vadd.f32 %v325_v41, %v322_v58  ;;  %v361_v9 = vmul.f32 %v360_v60, %v1192_v7  ;;  %s1388_s15 = sld [smem:[#allocation2 + $0x39]] }
  0x6e   : > { %v381_v10 = vstv %s1318_s23  ;;  %v368_v14 = vstv %s1323_s25  ;;  %v365_v17 = vmul.f32 %v364_v5, %v1202_v12  ;;  %v384_v18 = vstv %s1327_s24  ;;  %s1390_s23 = sld [smem:[#allocation2 + $0x3d]]  ;;  %s1392_s25 = sld [smem:[#allocation2 + $0x3e]] }
  0x6f   : > { %v831_v11 = vpop.eup %830  ;;  %834 = vpow2.f32 %v701_v61  ;;  %v354_v13 = vadd.f32 %v353_v56, %v350_v62  ;;  %v382_v15 = vmul.f32 %v381_v10, %v1157_v0  ;;  %v330_v16 = vadd.f32 %v329_v59, %v326_v6  ;;  %s1394_s24 = sld [smem:[#allocation2 + $0x3f]] }
  0x70   : > { %v388_v20 = vstv %s1329_s26  ;;  %v385_v22 = vmul.f32 %v384_v18, %v1164_v1  ;;  %v392_v24 = vstv %s1334_s27  ;;  %v369_v26 = vmul.f32 %v368_v14, %v1216_v19  ;;  %s1396_s26 = sld [smem:[#allocation2 + $0x40]]  ;;  %s1398_s27 = sld [smem:[#allocation2 + $0x41]] }
  0x71   : > { %v358_v21 = vadd.f32 %v357_v63, %v354_v13  ;;  %v389_v23 = vmul.f32 %v388_v20, %v1171_v2  ;;  %v333_v25 = vadd.f32 %v332_v8, %v330_v16  ;;  %v396_v0 = vstv %s1338_s30  ;;  %s1406_s30 = sld [smem:[#allocation2 + $0x42]] }
  0x72   : > { %v386_v28 = vadd.f32 %v385_v22, %v382_v15  ;;  %v393_v29 = vmul.f32 %v392_v24, %v1178_v3  ;;  %v400_v30 = vstv %s1342_s3  ;;  %v372_v34 = vstv %s1348_s4  ;;  %s1408_s3 = sld [smem:[#allocation2 + $0x43]]  ;;  %s1412_s4 = sld [smem:[#allocation2 + $0x44]] }
  0x73   : > { %v362_v27 = vadd.f32 %v361_v9, %v358_v21  ;;  %v711_v32 = vmul.f32 -1.442695, %v333_v25  ;;  %v397_v1 = vmul.f32 %v396_v0, %v1185_v4  ;;  %v217_v2 = vadd.f32 1.0, %v831_v11 }
  0x74   : > { %v833_v31 = vpop.eup %832  ;;  %v390_v35 = vadd.f32 %v389_v23, %v386_v28  ;;  %v401_v36 = vmul.f32 %v400_v30, %v1192_v7  ;;  %v404_v37 = vstv %s1353_s6  ;;  %v408_v41 = vstv %s1357_s8  ;;  %s1414_s6 = sld [smem:[#allocation2 + $0x45]]  ;;  %s1420_s8 = sld [smem:[#allocation2 + $0x46]] }
  0x75   : > { %v366_v33 = vadd.f32 %v365_v17, %v362_v27  ;;  %836 = vpow2.f32 %v711_v32  ;;  %v257_v38 = vadd.f32 1.0, %v833_v31  ;;  %v405_v44 = vmul.f32 %v404_v37, %v1202_v12 }
  0x76   : > { %v394_v40 = vadd.f32 %v393_v29, %v390_v35  ;;  %838 = vrcp.f32 %v217_v2  ;;  %v409_v45 = vmul.f32 %v408_v41, %v1216_v19  ;;  %v412_v12 = vstv %s730_s20  ;;  %s1422_s20 = sld [smem:[#allocation2 + $0x47]] }
  0x77   : > { %v370_v39 = vadd.f32 %v369_v26, %v366_v33  ;;  %840 = vrcp.f32 %v257_v38  ;;  %v421_v53 = vstv %s1376_s7  ;;  %v453_v54 = vstv %s1380_s18  ;;  %s1424_s7 = sld [smem:[#allocation2 + $0x48]]  ;;  %s1432_s18 = sld [smem:[#allocation2 + $0x4a]] }
  0x78   : > { %v398_v43 = vadd.f32 %v397_v1, %v394_v40  ;;  %v485_v55 = vstv %s1382_s17  ;;  %v424_v57 = vstv %s1378_s14  ;;  %v456_v58 = vstv %s1384_s19  ;;  %s1426_s14 = sld [smem:[#allocation2 + $0x49]]  ;;  %s1434_s17 = sld [smem:[#allocation2 + $0x4b]] }
  0x79   : > { %v835_v3 = vpop.eup %834  ;;  %v373_v42 = vadd.f32 %v372_v34, %v370_v39  ;;  %v488_v59 = vstv %s1386_s22  ;;  %v517_v60 = vstv %s1388_s15  ;;  %v520_v61 = vstv %s1390_s23  ;;  %s1436_s19 = sld [smem:[#allocation2 + $0x4c]]  ;;  %s761_s22 = sld [smem:[#allocation2 + $0x4d]] }
  0x7a   : > { %v297_v4 = vadd.f32 1.0, %v835_v3  ;;  %v402_v7 = vadd.f32 %v401_v36, %v398_v43  ;;  %v428_v14 = vstv %s1392_s25  ;;  %v460_v17 = vstv %s1394_s24  ;;  %s1442_s15 = sld [smem:[#allocation2 + $0x4e]]  ;;  %s1444_s23 = sld [smem:[#allocation2 + $0x4f]] }
  0x7b   : > { %v721_v46 = vmul.f32 -1.442695, %v373_v42  ;;  %v492_v18 = vstv %s1396_s26  ;;  %v524_v20 = vstv %s1398_s27  ;;  %v432_v29 = vstv %s1406_s30  ;;  %s754_s25 = sld [smem:[#allocation2 + $0x50]]  ;;  %s762_s24 = sld [smem:[#allocation2 + $0x51]] }
  0x7c   : > { %v406_v47 = vadd.f32 %v405_v44, %v402_v7  ;;  %v464_v31 = vstv %s1408_s3  ;;  %v496_v32 = vstv %s1412_s4  ;;  %v528_v33 = vstv %s1414_s6  ;;  %s764_s26 = sld [smem:[#allocation2 + $0x52]]  ;;  %s765_s27 = sld [smem:[#allocation2 + $0x53]] }
  0x7d   : > { %842 = vpow2.f32 %v721_v46  ;;  %v436_v3 = vstv %s1420_s8  ;;  %v468_v42 = vstv %s1422_s20  ;;  %v500_v43 = vstv %s1424_s7  ;;  %s766_s30 = sld [smem:[#allocation2 + $0x54]]  ;;  %s767_s3 = sld [smem:[#allocation2 + $0x55]] }
  0x7e   : > { %844 = vrcp.f32 %v297_v4  ;;  %v410_v19 = vadd.f32 %v409_v45, %v406_v47  ;;  %v532_v44 = vstv %s1426_s14  ;;  %s768_s4 = sld [smem:[#allocation2 + $0x56]]  ;;  %s770_s6 = sshll.u32 %s1030_s13, 4 }
  0x7f   : > { %v837_v48 = vpop.eup %836  ;;  %s171_s8 = scalar_lea.vmem [#allocation7], %s1144_s5  ;;  %s993_s13 = smov [#allocation7]  }
  0x80   : > { %v337_v49 = vadd.f32 1.0, %v837_v48  ;;  %v413_v50 = vadd.f32 %v412_v12, %v410_v19  ;;  %v839_v52 = vpop.eup %838  ;;  %s586_s20 = sshll.u32 %s171_s8, 4  ;;  %s1458_s20 = int_to_ptr.vmem [resolvable:$true] %s586_s20 }
  0x81   : > { %v841_v56 = vpop.eup %840  ;;  %v422_v63 = vmul.f32 %v839_v52, %v421_v53  ;;  %v454_v5 = vmul.f32 %v839_v52, %v453_v54  ;;  %v486_v6 = vmul.f32 %v839_v52, %v485_v55  ;;  %v518_v15 = vmul.f32 %v839_v52, %v517_v60 }
  0x82   : > { %v731_v51 = vmul.f32 -1.442695, %v413_v50  ;;  %846 = vrcp.f32 %v337_v49  ;;  %v425_v9 = vmul.f32 %v841_v56, %v424_v57  ;;  %v457_v10 = vmul.f32 %v841_v56, %v456_v58 }
  0x83   : > { %v489_v11 = vmul.f32 %v841_v56, %v488_v59  ;;  %v521_v16 = vmul.f32 %v841_v56, %v520_v61  ;;  %v440_v49 = vstv %s1432_s18  ;;  %v472_v50 = vstv %s1434_s17  ;;  %s1456_s18 = scalar_lea.hbm %s1501_s2, %s770_s6  ;;  %s574_s17 = scalar_lea.sflag [#allocation4], %s1144_s5 }
  0x84   : > { %848 = vpow2.f32 %v731_v51  ;;  %v426_v21 = vadd.f32 %v425_v9, %v422_v63  ;;  %v458_v23 = vadd.f32 %v457_v10, %v454_v5  ;;  %v504_v51 = vstv %s1436_s19  ;;  %s919_s19 = scalar_lea.vmem %s1458_s20, 16 }
  0x85   : > { %v490_v24 = vadd.f32 %v489_v11, %v486_v6  ;;  %v522_v0 = vadd.f32 %v521_v16, %v518_v15  ;;  %v536_v52 = vstv %s761_s22  ;;  %v476_v63 = vstv %s1444_s23  ;;  %p920_p8 = scmp.ne.s32.totalorder %s1458_s20, %s919_s19  ;;  %s923_s22 = sshll.u32 %s993_s13, 4  ;;  %s924_s22 = int_to_ptr.vmem [resolvable:$false] %s923_s22 }
  0x86   : > { %v508_v5 = vstv %s754_s25  ;;  %v540_v6 = vstv %s762_s24  ;;  %p926_p0 = scmp.lt.s32.totalorder %s1458_s20, %s924_s22 }
  0x87   : > { %v843_v62 = vpop.eup %842  ;;  %p921_p10 = pnand %p920_p8, %p1516_p13 }
  0x88   : > { %v377_v8 = vadd.f32 1.0, %v843_v62  ;;  %v845_v13 = vpop.eup %844  ;;  %v444_v62 = vstv %s1442_s15  ;;  %s925_s15 = scalar_lea.vmem %s924_s22, 32 }
  0x89   : > { %v429_v22 = vmul.f32 %v845_v13, %v428_v14  ;;  %v461_v25 = vmul.f32 %v845_v13, %v460_v17  ;;  %v493_v26 = vmul.f32 %v845_v13, %v492_v18  ;;  %v525_v27 = vmul.f32 %v845_v13, %v524_v20  ;;  %p922_p7 = pneg %p921_p10  ;;  %p927_p3 = scmp.lt.s32.totalorder %s925_s15, %s919_s19 }
  0x8a   : > { %850 = vrcp.f32 %v377_v8 }
  0x8b   : > { %v430_v35 = vadd.f32 %v429_v22, %v426_v21  ;;  %v462_v2 = vadd.f32 %v461_v25, %v458_v23  ;;  %v494_v36 = vadd.f32 %v493_v26, %v490_v24  ;;  %v526_v37 = vadd.f32 %v525_v27, %v522_v0  ;;  %p928_p11 = por %p927_p3, %p926_p0 }
  0x8c   : > { %v847_v28 = vpop.eup %846 }
  0x8d   : > { %v433_v1 = vmul.f32 %v847_v28, %v432_v29  ;;  %v465_v38 = vmul.f32 %v847_v28, %v464_v31  ;;  %v497_v39 = vmul.f32 %v847_v28, %v496_v32  ;;  %v529_v40 = vmul.f32 %v847_v28, %v528_v33  ;;  %p929_p5 = pnand %p928_p11, %p922_p7 }
  0x8e   : > { %v849_v30 = vpop.eup %848  ;;  %v549_v29 = vstv %s764_s26  ;;  %v556_v32 = vstv %s766_s30 }
  0x8f   : > { %v417_v34 = vadd.f32 1.0, %v849_v30  ;;  %v434_v45 = vadd.f32 %v433_v1, %v430_v35  ;;  %v466_v4 = vadd.f32 %v465_v38, %v462_v2  ;;  %v498_v46 = vadd.f32 %v497_v39, %v494_v36 }
  0x90   : > { %v530_v7 = vadd.f32 %v529_v40, %v526_v37  ;;  %v552_v30 = vstv %s765_s27  ;;  %v560_v35 = vstv %s767_s3 }
  0x91   : > { %852 = vrcp.f32 %v417_v34 }
  0x94   : > { %v851_v41 = vpop.eup %850 }
  0x95   : > { %v437_v47 = vmul.f32 %v851_v41, %v436_v3  ;;  %v469_v12 = vmul.f32 %v851_v41, %v468_v42  ;;  %v501_v19 = vmul.f32 %v851_v41, %v500_v43  ;;  %v533_v48 = vmul.f32 %v851_v41, %v532_v44 }
  0x96   : > { %v564_v41 = vstv %s768_s4 }
  0x97   : > { %v438_v53 = vadd.f32 %v437_v47, %v434_v45  ;;  %v470_v54 = vadd.f32 %v469_v12, %v466_v4  ;;  %v502_v55 = vadd.f32 %v501_v19, %v498_v46  ;;  %v534_v56 = vadd.f32 %v533_v48, %v530_v7 }
  0x9b   : > { %v853_v57 = vpop.eup %852 }
  0x9c   : > { %v441_v58 = vmul.f32 %v853_v57, %v440_v49  ;;  %v473_v59 = vmul.f32 %v853_v57, %v472_v50  ;;  %v505_v60 = vmul.f32 %v853_v57, %v504_v51  ;;  %v537_v61 = vmul.f32 %v853_v57, %v536_v52 }
  0x9e   : > { %v442_v8 = vadd.f32 %v441_v58, %v438_v53  ;;  %v474_v9 = vadd.f32 %v473_v59, %v470_v54  ;;  %v506_v10 = vadd.f32 %v505_v60, %v502_v55  ;;  %v538_v11 = vadd.f32 %v537_v61, %v534_v56 }
  0xa0   : > { %v445_v13 = vadd.f32 %v444_v62, %v442_v8  ;;  %v477_v14 = vadd.f32 %v476_v63, %v474_v9  ;;  %v509_v15 = vadd.f32 %v508_v5, %v506_v10  ;;  %v541_v16 = vadd.f32 %v540_v6, %v538_v11 }
  0xa2   : > { %v739_v17 = vmul.f32 -1.442695, %v445_v13  ;;  %v747_v18 = vmul.f32 -1.442695, %v477_v14  ;;  %v755_v20 = vmul.f32 -1.442695, %v509_v15 }
  0xa3   : > { %v763_v21 = vmul.f32 -1.442695, %v541_v16 }
  0xa4   : > { %854 = vpow2.f32 %v739_v17 }
  0xa5   : > { %856 = vpow2.f32 %v747_v18 }
  0xa6   : > { %858 = vpow2.f32 %v755_v20 }
  0xa7   : > { %860 = vpow2.f32 %v763_v21 }
  0xae   : > { %v855_v22 = vpop.eup %854 }
  0xaf   : > { %v857_v23 = vpop.eup %856  ;;  %v449_v24 = vadd.f32 1.0, %v855_v22 }
  0xb0   : > { %v859_v25 = vpop.eup %858  ;;  %v481_v26 = vadd.f32 1.0, %v857_v23 }
  0xb1   : > { %v861_v0 = vpop.eup %860  ;;  %862 = vrcp.f32 %v449_v24  ;;  %v513_v27 = vadd.f32 1.0, %v859_v25 }
  0xb2   : > { %864 = vrcp.f32 %v481_v26  ;;  %v545_v28 = vadd.f32 1.0, %v861_v0 }
  0xb3   : > { %866 = vrcp.f32 %v513_v27 }
  0xb4   : > { %868 = vrcp.f32 %v545_v28 }
  0xbb   : > { %v863_v31 = vpop.eup %862 }
  0xbc   : > { %v865_v33 = vpop.eup %864  ;;  %v550_v34 = vmul.f32 %v863_v31, %v549_v29 }
  0xbd   : > { %v867_v1 = vpop.eup %866  ;;  %v553_v2 = vmul.f32 %v865_v33, %v552_v30 }
  0xbe   : > { %v869_v36 = vpop.eup %868  ;;  %v557_v37 = vmul.f32 %v867_v1, %v556_v32 }
  0xbf   : > { %v554_v38 = vadd.f32 %v553_v2, %v550_v34  ;;  %v561_v39 = vmul.f32 %v869_v36, %v560_v35 }
  0xc1   : > { %v558_v40 = vadd.f32 %v557_v37, %v554_v38 }
  0xc3   : > { %v562_v3 = vadd.f32 %v561_v39, %v558_v40 }
  0xc5   : > { %v565_v42 = vadd.f32 %v564_v41, %v562_v3 }
  0xc7   : > { %v769_v43 = vmul.f32 -1.442695, %v565_v42 }
  0xc9   : > { %870 = vpow2.f32 %v769_v43 }
  0xd3   : > { %v871_v44 = vpop.eup %870 }
  0xd4   : > { %v569_v45 = vadd.f32 1.0, %v871_v44 }
  0xd6   : > { %872 = vrcp.f32 %v569_v45 }
  0xe0   : > { %v873_v4 = vpop.eup %872 }
  0xe1   : > { %572 = vst [vmem:[%s171_s8] sm:$0x1] %v873_v4 }
  0xe2   : > { %932 = shalt.err (!%p929_p5)
}
  0xe3   : > { %s933_s5 = scalar_lea.hbm %s1456_s18, 16  ;;  %s937_s24 = scalar_lea.hbm %s1501_s2, 64 }
  0xe4   : > { %p934_p9 = scmp.ne.s32.totalorder %s1456_s18, %s933_s5  ;;  %p938_p6 = scmp.lt.u32.totalorder %s1456_s18, %s1501_s2 }
  0xe5   : > { %p939_p12 = scmp.lt.u32.totalorder %s937_s24, %s933_s5  ;;  %p941_p8 = scmp.lt.u32.totalorder %s933_s5, %s1456_s18 }
  0xe6   : > { %p935_p2 = pnand %p934_p9, %p1516_p13 }
  0xe7   : > { %p940_p4 = por %p939_p12, %p938_p6 }
  0xe8   : > { %p936_p1 = pneg %p935_p2 }
  0xe9   : > { %p942_p10 = por %p941_p8, %p940_p4 }
  0xeb   : > { %p943_p7 = pnand %p942_p10, %p936_p1 }
  0xed   : > { %946 = shalt.err (!%p943_p7)
}
  0xee   : > { %779 = dma.vmem_to_hbm [thread:$0]  (%p1516_p13), %s1458_s20, 16, %s1456_s18, %s574_s17  }
  0xef PF: > { %p796_p0 = scmp.ge.s32.totalorder %s989_s12, 2  ;;  %s598_s30 = sand.u32 1, %s977_s9  }
  0xf0   : > { %p1517_p3 = scmp.ne.s32.totalorder %s1506_s16, 0  ;;  %s599_s3 = scalar_lea.sflag [#allocation4], %s598_s30 }
  0xf2   : > { %p790_p11 = pnand %p796_p0, %p1517_p3 }
  0xf4   : > { %972 = dma.done.wait (!%p790_p11), %s599_s3, 16  }
  0xf5   : > { %974 = vsyncadd (!%p790_p11), %s599_s3, 4294967280  ;;  %p16_p5 = scmp.ge.s32.totalorder %s1059_s21, 6   ;;  %s1518_s9 = smov %s981_s10 }
  0xf6   : > { %s1519_s10 = smov %s985_s11  ;;  %s1520_s11 = smov %s1083_s28 }
  0xf7   : > { %s1521_s12 = smov %s1059_s21  ;;  %18 = sbr.rel (!%p16_p5) target bundleno = 6 (0x6), region = 78 }
  0xfe   :  { %603 = vsyncpa [#allocation3], 1 }
  0xff   :  { %605 = vsyncpa [#allocation3 + $0x1], 1 }
 0x100   :  { %606 = vsyncpa [#allocation4], 1 }
 0x101   :  { %608 = vsyncpa [#allocation4 + $0x1], 1 }
 0x102   :  { %609 = vsyncpa [#allocation5], 1 }
 0x103   :  { %611 = vsyncpa [#allocation5 + $0x1], 1 }

</bundles_post_ra>
